<compile_context>
chip_gen: v7x
topology: tpu7x:2x2x1
jax: 0.10.0
libtpu: 0.0.40
codegen_flags: <defaults>
</compile_context>

<pallas_src>
import functools
import math

import jax
import jax.numpy as jnp
from jax.experimental import pallas as pl
from jax.experimental.pallas import tpu as pltpu

_LANE = 128
_MIB = 1024 * 1024


# ----------------------------------------------------------------------------- kernel
def _policy_kernel(x_ref, w1_ref, b1_ref, w2_ref, b2_ref, w3_ref, b3_ref, out_ref,
                   *, pack):
    """One batch tile: mean = tanh(tanh(x@W1+b1)@W2+b2)@W3+b3.

    Matmul operands are cast to bf16 in-kernel; accumulation is f32 via
    preferred_element_type. With pack > 1 the (TB, A) result is written as a
    lane-dense (TB//pack, A*pack) block (row-major repack).
    """
    x = x_ref[...].astype(jnp.bfloat16)
    h1 = jnp.tanh(
        jnp.dot(x, w1_ref[...].astype(jnp.bfloat16),
                preferred_element_type=jnp.float32) + b1_ref[...])
    h2 = jnp.tanh(
        jnp.dot(h1.astype(jnp.bfloat16), w2_ref[...].astype(jnp.bfloat16),
                preferred_element_type=jnp.float32) + b2_ref[...])
    mean = jnp.dot(h2.astype(jnp.bfloat16), w3_ref[...].astype(jnp.bfloat16),
                   preferred_element_type=jnp.float32) + b3_ref[...]
    if pack > 1:
        tb, a = mean.shape
        mean = mean.reshape(tb // pack, a * pack)   # same bytes, dense lanes
    out_ref[...] = mean.astype(out_ref.dtype)


# ----------------------------------------------------------------------------- helpers
def _round_up(x, m):
    return ((x + m - 1) // m) * m


def _tpu_generation():
    try:
        kind = jax.devices()[0].device_kind.lower()
    except Exception:
        return 0
    for g in (7, 6, 5, 4):
        if f"v{g}" in kind:
            return g
    return 0


# (tb_max, vmem_limit_bytes) per TPU generation; footprint ~2.8 KiB / batch row.
_GEN_TILING = {
    5: (8192, 64 * _MIB),    # v5e: 128 MiB physical, scoped default only 16 MiB
    6: (16384, 96 * _MIB),   # v6e: 128 MiB physical -> biggest tiles
    7: (8192, 48 * _MIB),    # v7x: 64 MiB physical per TC -> keep headroom
}
_DEFAULT_TILING = (8192, 48 * _MIB)


def _xla_forward_mean(state, p):
    """Plain-XLA path for tiny batches (kernel fixed overhead not amortizable)."""
    h1 = jnp.tanh(state @ p["w1"] + p["b1"])
    h2 = jnp.tanh(h1 @ p["w2"] + p["b2"])
    return h2 @ p["w3"] + p["b3"]


def _pallas_forward_mean(state, p, tb_max, vmem_limit_bytes, pack):
    B, S = state.shape
    H1 = p["w1"].shape[1]
    H2 = p["w2"].shape[1]
    A = p["w3"].shape[1]

    # Batch tile: multiple of 8 sublanes; multiple of 8*pack so the packed out
    # block's second-minor dim stays a multiple of 8.
    align = 8 * pack if pack > 1 else 8
    tb = max(align, (min(tb_max, _round_up(B, align)) // align) * align)
    bp = _round_up(B, tb)
    n_tiles = bp // tb

    if pack > 1:
        out_shape = jax.ShapeDtypeStruct((bp // pack, A * pack), jnp.float32)
        out_spec = pl.BlockSpec((tb // pack, A * pack), lambda i: (i, 0))
    else:
        out_shape = jax.ShapeDtypeStruct((bp, A), jnp.float32)
        out_spec = pl.BlockSpec((tb, A), lambda i: (i, 0))

    def const(a):  # resident block: constant index_map -> DMA'd once, stays in VMEM
        return pl.BlockSpec(a.shape, lambda i, _nd=a.ndim: (0,) * _nd)

    gen = _tpu_generation()
    if gen >= 7 and n_tiles >= 2:
        dim_sem = (pltpu.CORE_PARALLEL,)    # shard batch tiles across v7x's 2 TCs
    else:
        dim_sem = ("parallel",)

    cost = pl.CostEstimate(
        flops=2 * B * (S * H1 + H1 * H2 + H2 * A),
        transcendentals=B * (H1 + H2),
        bytes_accessed=B * (S + A) * 4 + 4 * (S * H1 + H1 * H2 + H2 * A + H1 + H2 + A),
    )

    mean = pl.pallas_call(
        functools.partial(_policy_kernel, pack=pack),
        out_shape=out_shape,
        grid=(n_tiles,),
        in_specs=[
            pl.BlockSpec((tb, S), lambda i: (i, 0)),   # stream f32 state by batch tile
            const(p["w1"]), const(p["b1"]),
            const(p["w2"]), const(p["b2"]),
            const(p["w3"]), const(p["b3"]),
        ],
        out_specs=out_spec,
        compiler_params=pltpu.CompilerParams(
            dimension_semantics=dim_sem,
            vmem_limit_bytes=vmem_limit_bytes),
        cost_estimate=cost,
    )(state, p["w1"], p["b1"], p["w2"], p["b2"], p["w3"], p["b3"])

    # Free row-major reshape back to (bp, A); drop padded / garbage rows.
    return mean.reshape(bp, A)[:B]


# ----------------------------------------------------------------------------- public API
def policy_network_forward(state, params, *, tb_max=None, vmem_limit_bytes=None,
                           min_pallas_batch=1024, force_pallas=False):
    """Fused policy-net forward. Returns (mean, log_std, std), matching the torch module."""
    B, _ = state.shape
    A = params["w3"].shape[1]
    log_std = params["log_std"]

    gen_tb, gen_vmem = _GEN_TILING.get(_tpu_generation(), _DEFAULT_TILING)
    tb_max = gen_tb if tb_max is None else tb_max
    vmem_limit_bytes = gen_vmem if vmem_limit_bytes is None else vmem_limit_bytes

    if B < min_pallas_batch and not force_pallas:
        mean = _xla_forward_mean(state, params)
    else:
        pack = _LANE // A if (_LANE % A == 0 and A < _LANE) else 1
        try:
            mean = _pallas_forward_mean(state, params, tb_max, vmem_limit_bytes, pack)
        except Exception:
            if pack == 1:
                raise
            # TODO(synk): fallback if the lane-dense in-kernel repack fails to lower
            mean = _pallas_forward_mean(state, params, tb_max, vmem_limit_bytes, 1)

    # log_std / std are batch-replicated constants: compute once in the wrapper.
    a_log_std = jnp.broadcast_to(log_std, (B, A))
    a_std = jnp.broadcast_to(jnp.exp(log_std), (B, A))
    return mean, a_log_std, a_std


def init_params(key, state_dim, action_dim, log_std=0.0):
    """Parameter init mirroring nn.Linear (weights stored as (in, out) so x@W+b)."""
    ks = jax.random.split(key, 6)

    def linear_init(kw, kb, fan_in, fan_out):
        bound = 1.0 / math.sqrt(fan_in)     # PyTorch default U(-1/sqrt(in), 1/sqrt(in))
        w = jax.random.uniform(kw, (fan_in, fan_out), jnp.float32, -bound, bound)
        b = jax.random.uniform(kb, (1, fan_out), jnp.float32, -bound, bound)
        return w, b

    w1, b1 = linear_init(ks[0], ks[1], state_dim, 64)
    w2, b2 = linear_init(ks[2], ks[3], 64, 64)
    w3, b3 = linear_init(ks[4], ks[5], 64, action_dim)
    return {
        "w1": w1, "b1": b1,
        "w2": w2, "b2": b2,
        "w3": w3, "b3": b3,
        "log_std": jnp.ones((1, action_dim), jnp.float32) * log_std,
    }


def _reference_forward(state, p, cast_bf16=False):
    """Pure-JAX reference. cast_bf16=True matches the kernel's mixed precision."""
    if cast_bf16:
        x = state.astype(jnp.bfloat16)
        w1, w2, w3 = (p[k].astype(jnp.bfloat16) for k in ("w1", "w2", "w3"))
    else:
        x, w1, w2, w3 = state, p["w1"], p["w2"], p["w3"]
    dot = lambda a, b: jnp.dot(a, b, preferred_element_type=jnp.float32)
    h1 = jnp.tanh(dot(x, w1) + p["b1"])
    h2 = jnp.tanh(dot(h1.astype(w2.dtype), w2) + p["b2"])
    mean = dot(h2.astype(w3.dtype), w3) + p["b3"]
    log_std = jnp.broadcast_to(p["log_std"], mean.shape)
    return mean, log_std, jnp.exp(log_std)


if __name__ == "__main__":
    key = jax.random.PRNGKey(0)
    k_param, k_state1, k_state2 = jax.random.split(key, 3)

    state_dim, action_dim = 16, 4
    params = init_params(k_param, state_dim, action_dim, log_std=0.0)

    # 1) Tiny batch (B=2): routed to the plain-XLA path (below min_pallas_batch).
    state_small = jax.random.normal(k_state1, (2, state_dim), jnp.float32)
    mean_s, ls_s, std_s = policy_network_forward(state_small, params)
    jax.block_until_ready((mean_s, ls_s, std_s))
    ref_m, ref_ls, ref_std = _reference_forward(state_small, params)
    assert jnp.allclose(mean_s, ref_m, atol=1e-5, rtol=1e-5)
    assert jnp.allclose(ls_s, ref_ls, atol=1e-6)
    assert jnp.allclose(std_s, ref_std, atol=1e-6)

    # 2) Force the Pallas kernel at small shapes: tb_max=256 -> grid=(2,),
    #    exercises batch tiling, the lane-dense packed output and the ragged
    #    last block (300 rows -> padded to 512, garbage rows masked/sliced).
    B = 300
    state_big = jax.random.normal(k_state2, (B, state_dim), jnp.float32)
    mean_p, lsp, stdp = policy_network_forward(state_big, params,
                                               tb_max=256, force_pallas=True)
    jax.block_until_ready((mean_p, lsp, stdp))

    # Tight check vs precision-matched (bf16 operands, f32 accum) reference.
    ref_bf, ref_ls2, ref_std2 = _reference_forward(state_big, params, cast_bf16=True)
    assert jnp.allclose(mean_p, ref_bf, atol=1e-3, rtol=1e-3)
    # Loose sanity check vs full-f32 reference (bf16 quantization only).
    ref_f32, _, _ = _reference_forward(state_big, params, cast_bf16=False)
    assert jnp.allclose(mean_p, ref_f32, atol=5e-2, rtol=5e-2)
    assert jnp.allclose(lsp, ref_ls2, atol=1e-6)
    assert jnp.allclose(stdp, ref_std2, atol=1e-6)

    print("KERNEL_OK")
</pallas_src>

<mosaic_0001>
module attributes {stable_mosaic.version = 11 : i64} {
  func.func @_policy_kernel(%arg0: i32, %arg1: memref<256x16xf32, #tpu.memory_space<vmem>>, %arg2: memref<16x64xf32, #tpu.memory_space<vmem>>, %arg3: memref<1x64xf32, #tpu.memory_space<vmem>>, %arg4: memref<64x64xf32, #tpu.memory_space<vmem>>, %arg5: memref<1x64xf32, #tpu.memory_space<vmem>>, %arg6: memref<64x4xf32, #tpu.memory_space<vmem>>, %arg7: memref<1x4xf32, #tpu.memory_space<vmem>>, %arg8: memref<8x128xf32, #tpu.memory_space<vmem>>) attributes {dimension_semantics = [#tpu.dimension_semantics<parallel>], iteration_bounds = array<i64: 2>, scalar_prefetch = 0 : i64, scratch_operands = 0 : i64, tpu.core_type = #tpu.core_type<tc>, window_params = [{transform_indices = @transform_0, window_bounds = array<i64: 256, 16>}, {pipeline_mode = #tpu.pipeline_mode<synchronous>, transform_indices = @transform_1, window_bounds = array<i64: 16, 64>}, {pipeline_mode = #tpu.pipeline_mode<synchronous>, transform_indices = @transform_2, window_bounds = array<i64: 1, 64>}, {pipeline_mode = #tpu.pipeline_mode<synchronous>, transform_indices = @transform_3, window_bounds = array<i64: 64, 64>}, {pipeline_mode = #tpu.pipeline_mode<synchronous>, transform_indices = @transform_4, window_bounds = array<i64: 1, 64>}, {pipeline_mode = #tpu.pipeline_mode<synchronous>, transform_indices = @transform_5, window_bounds = array<i64: 64, 4>}, {pipeline_mode = #tpu.pipeline_mode<synchronous>, transform_indices = @transform_6, window_bounds = array<i64: 1, 4>}, {transform_indices = @transform_7, window_bounds = array<i64: 8, 128>}]} {
    %c0 = arith.constant 0 : index
    %c0_0 = arith.constant 0 : index
    %0 = vector.load %arg1[%c0, %c0_0] : memref<256x16xf32, #tpu.memory_space<vmem>>, vector<256x16xf32>
    %1 = arith.truncf %0 : vector<256x16xf32> to vector<256x16xbf16>
    %c0_1 = arith.constant 0 : index
    %c0_2 = arith.constant 0 : index
    %2 = vector.load %arg2[%c0_1, %c0_2] : memref<16x64xf32, #tpu.memory_space<vmem>>, vector<16x64xf32>
    %3 = arith.truncf %2 : vector<16x64xf32> to vector<16x64xbf16>
    %cst = arith.constant dense<0.000000e+00> : vector<256x64xf32>
    %4 = tpu.matmul %1, %3, %cst {dimension_numbers = #tpu.dot_dimension_numbers<[1], [0], [0], [1], [0, 0, 1, 1], [], []>} : vector<256x16xbf16>, vector<16x64xbf16>, vector<256x64xf32> -> vector<256x64xf32>
    %c0_3 = arith.constant 0 : index
    %c0_4 = arith.constant 0 : index
    %5 = vector.load %arg3[%c0_3, %c0_4] : memref<1x64xf32, #tpu.memory_space<vmem>>, vector<1x64xf32>
    %6 = vector.broadcast %5 : vector<1x64xf32> to vector<256x64xf32>
    %7 = arith.addf %4, %6 : vector<256x64xf32>
    %8 = math.tanh %7 : vector<256x64xf32>
    %9 = arith.truncf %8 : vector<256x64xf32> to vector<256x64xbf16>
    %c0_5 = arith.constant 0 : index
    %c0_6 = arith.constant 0 : index
    %10 = vector.load %arg4[%c0_5, %c0_6] : memref<64x64xf32, #tpu.memory_space<vmem>>, vector<64x64xf32>
    %11 = arith.truncf %10 : vector<64x64xf32> to vector<64x64xbf16>
    %cst_7 = arith.constant dense<0.000000e+00> : vector<256x64xf32>
    %12 = tpu.matmul %9, %11, %cst_7 {dimension_numbers = #tpu.dot_dimension_numbers<[1], [0], [0], [1], [0, 0, 1, 1], [], []>} : vector<256x64xbf16>, vector<64x64xbf16>, vector<256x64xf32> -> vector<256x64xf32>
    %c0_8 = arith.constant 0 : index
    %c0_9 = arith.constant 0 : index
    %13 = vector.load %arg5[%c0_8, %c0_9] : memref<1x64xf32, #tpu.memory_space<vmem>>, vector<1x64xf32>
    %14 = vector.broadcast %13 : vector<1x64xf32> to vector<256x64xf32>
    %15 = arith.addf %12, %14 : vector<256x64xf32>
    %16 = math.tanh %15 : vector<256x64xf32>
    %17 = arith.truncf %16 : vector<256x64xf32> to vector<256x64xbf16>
    %c0_10 = arith.constant 0 : index
    %c0_11 = arith.constant 0 : index
    %18 = vector.load %arg6[%c0_10, %c0_11] : memref<64x4xf32, #tpu.memory_space<vmem>>, vector<64x4xf32>
    %19 = arith.truncf %18 : vector<64x4xf32> to vector<64x4xbf16>
    %cst_12 = arith.constant dense<0.000000e+00> : vector<256x4xf32>
    %20 = tpu.matmul %17, %19, %cst_12 {dimension_numbers = #tpu.dot_dimension_numbers<[1], [0], [0], [1], [0, 0, 1, 1], [], []>} : vector<256x64xbf16>, vector<64x4xbf16>, vector<256x4xf32> -> vector<256x4xf32>
    %c0_13 = arith.constant 0 : index
    %c0_14 = arith.constant 0 : index
    %21 = vector.load %arg7[%c0_13, %c0_14] : memref<1x4xf32, #tpu.memory_space<vmem>>, vector<1x4xf32>
    %22 = vector.broadcast %21 : vector<1x4xf32> to vector<256x4xf32>
    %23 = arith.addf %20, %22 : vector<256x4xf32>
    %24 = vector.shape_cast %23 : vector<256x4xf32> to vector<8x128xf32>
    %c0_15 = arith.constant 0 : index
    %c0_16 = arith.constant 0 : index
    %25 = vector.load %arg8[%c0_15, %c0_16] : memref<8x128xf32, #tpu.memory_space<vmem>>, vector<8x128xf32>
    tpu.vector_store %arg8[%c0_15, %c0_16], %24 {strides = array<i32>} : memref<8x128xf32, #tpu.memory_space<vmem>>, vector<8x128xf32>,
    return
  }
  func.func @transform_0(%arg0: i32) -> (i32, i32) {
    %c0_i32 = arith.constant 0 : i32
    %c0_i32_0 = arith.constant 0 : i32
    return %arg0, %c0_i32 : i32, i32
  }
  func.func @transform_1(%arg0: i32) -> (i32, i32) {
    %c0_i32 = arith.constant 0 : i32
    %c0_i32_0 = arith.constant 0 : i32
    %c0_i32_1 = arith.constant 0 : i32
    return %c0_i32, %c0_i32_0 : i32, i32
  }
  func.func @transform_2(%arg0: i32) -> (i32, i32) {
    %c0_i32 = arith.constant 0 : i32
    %c0_i32_0 = arith.constant 0 : i32
    %c0_i32_1 = arith.constant 0 : i32
    return %c0_i32, %c0_i32_0 : i32, i32
  }
  func.func @transform_3(%arg0: i32) -> (i32, i32) {
    %c0_i32 = arith.constant 0 : i32
    %c0_i32_0 = arith.constant 0 : i32
    %c0_i32_1 = arith.constant 0 : i32
    return %c0_i32, %c0_i32_0 : i32, i32
  }
  func.func @transform_4(%arg0: i32) -> (i32, i32) {
    %c0_i32 = arith.constant 0 : i32
    %c0_i32_0 = arith.constant 0 : i32
    %c0_i32_1 = arith.constant 0 : i32
    return %c0_i32, %c0_i32_0 : i32, i32
  }
  func.func @transform_5(%arg0: i32) -> (i32, i32) {
    %c0_i32 = arith.constant 0 : i32
    %c0_i32_0 = arith.constant 0 : i32
    %c0_i32_1 = arith.constant 0 : i32
    return %c0_i32, %c0_i32_0 : i32, i32
  }
  func.func @transform_6(%arg0: i32) -> (i32, i32) {
    %c0_i32 = arith.constant 0 : i32
    %c0_i32_0 = arith.constant 0 : i32
    %c0_i32_1 = arith.constant 0 : i32
    return %c0_i32, %c0_i32_0 : i32, i32
  }
  func.func @transform_7(%arg0: i32) -> (i32, i32) {
    %c0_i32 = arith.constant 0 : i32
    %c0_i32_0 = arith.constant 0 : i32
    return %arg0, %c0_i32 : i32, i32
  }
}

module attributes {stable_mosaic.version = 11 : i64} {
  func.func @_policy_kernel(%arg0: i32, %arg1: memref<256x16xf32, #tpu.memory_space<vmem>>, %arg2: memref<16x64xf32, #tpu.memory_space<vmem>>, %arg3: memref<1x64xf32, #tpu.memory_space<vmem>>, %arg4: memref<64x64xf32, #tpu.memory_space<vmem>>, %arg5: memref<1x64xf32, #tpu.memory_space<vmem>>, %arg6: memref<64x4xf32, #tpu.memory_space<vmem>>, %arg7: memref<1x4xf32, #tpu.memory_space<vmem>>, %arg8: memref<256x4xf32, #tpu.memory_space<vmem>>) attributes {dimension_semantics = [#tpu.dimension_semantics<parallel>], iteration_bounds = array<i64: 2>, scalar_prefetch = 0 : i64, scratch_operands = 0 : i64, tpu.core_type = #tpu.core_type<tc>, window_params = [{transform_indices = @transform_0, window_bounds = array<i64: 256, 16>}, {pipeline_mode = #tpu.pipeline_mode<synchronous>, transform_indices = @transform_1, window_bounds = array<i64: 16, 64>}, {pipeline_mode = #tpu.pipeline_mode<synchronous>, transform_indices = @transform_2, window_bounds = array<i64: 1, 64>}, {pipeline_mode = #tpu.pipeline_mode<synchronous>, transform_indices = @transform_3, window_bounds = array<i64: 64, 64>}, {pipeline_mode = #tpu.pipeline_mode<synchronous>, transform_indices = @transform_4, window_bounds = array<i64: 1, 64>}, {pipeline_mode = #tpu.pipeline_mode<synchronous>, transform_indices = @transform_5, window_bounds = array<i64: 64, 4>}, {pipeline_mode = #tpu.pipeline_mode<synchronous>, transform_indices = @transform_6, window_bounds = array<i64: 1, 4>}, {transform_indices = @transform_7, window_bounds = array<i64: 256, 4>}]} {
    %c0 = arith.constant 0 : index
    %c0_0 = arith.constant 0 : index
    %0 = vector.load %arg1[%c0, %c0_0] : memref<256x16xf32, #tpu.memory_space<vmem>>, vector<256x16xf32>
    %1 = arith.truncf %0 : vector<256x16xf32> to vector<256x16xbf16>
    %c0_1 = arith.constant 0 : index
    %c0_2 = arith.constant 0 : index
    %2 = vector.load %arg2[%c0_1, %c0_2] : memref<16x64xf32, #tpu.memory_space<vmem>>, vector<16x64xf32>
    %3 = arith.truncf %2 : vector<16x64xf32> to vector<16x64xbf16>
    %cst = arith.constant dense<0.000000e+00> : vector<256x64xf32>
    %4 = tpu.matmul %1, %3, %cst {dimension_numbers = #tpu.dot_dimension_numbers<[1], [0], [0], [1], [0, 0, 1, 1], [], []>} : vector<256x16xbf16>, vector<16x64xbf16>, vector<256x64xf32> -> vector<256x64xf32>
    %c0_3 = arith.constant 0 : index
    %c0_4 = arith.constant 0 : index
    %5 = vector.load %arg3[%c0_3, %c0_4] : memref<1x64xf32, #tpu.memory_space<vmem>>, vector<1x64xf32>
    %6 = vector.broadcast %5 : vector<1x64xf32> to vector<256x64xf32>
    %7 = arith.addf %4, %6 : vector<256x64xf32>
    %8 = math.tanh %7 : vector<256x64xf32>
    %9 = arith.truncf %8 : vector<256x64xf32> to vector<256x64xbf16>
    %c0_5 = arith.constant 0 : index
    %c0_6 = arith.constant 0 : index
    %10 = vector.load %arg4[%c0_5, %c0_6] : memref<64x64xf32, #tpu.memory_space<vmem>>, vector<64x64xf32>
    %11 = arith.truncf %10 : vector<64x64xf32> to vector<64x64xbf16>
    %cst_7 = arith.constant dense<0.000000e+00> : vector<256x64xf32>
    %12 = tpu.matmul %9, %11, %cst_7 {dimension_numbers = #tpu.dot_dimension_numbers<[1], [0], [0], [1], [0, 0, 1, 1], [], []>} : vector<256x64xbf16>, vector<64x64xbf16>, vector<256x64xf32> -> vector<256x64xf32>
    %c0_8 = arith.constant 0 : index
    %c0_9 = arith.constant 0 : index
    %13 = vector.load %arg5[%c0_8, %c0_9] : memref<1x64xf32, #tpu.memory_space<vmem>>, vector<1x64xf32>
    %14 = vector.broadcast %13 : vector<1x64xf32> to vector<256x64xf32>
    %15 = arith.addf %12, %14 : vector<256x64xf32>
    %16 = math.tanh %15 : vector<256x64xf32>
    %17 = arith.truncf %16 : vector<256x64xf32> to vector<256x64xbf16>
    %c0_10 = arith.constant 0 : index
    %c0_11 = arith.constant 0 : index
    %18 = vector.load %arg6[%c0_10, %c0_11] : memref<64x4xf32, #tpu.memory_space<vmem>>, vector<64x4xf32>
    %19 = arith.truncf %18 : vector<64x4xf32> to vector<64x4xbf16>
    %cst_12 = arith.constant dense<0.000000e+00> : vector<256x4xf32>
    %20 = tpu.matmul %17, %19, %cst_12 {dimension_numbers = #tpu.dot_dimension_numbers<[1], [0], [0], [1], [0, 0, 1, 1], [], []>} : vector<256x64xbf16>, vector<64x4xbf16>, vector<256x4xf32> -> vector<256x4xf32>
    %c0_13 = arith.constant 0 : index
    %c0_14 = arith.constant 0 : index
    %21 = vector.load %arg7[%c0_13, %c0_14] : memref<1x4xf32, #tpu.memory_space<vmem>>, vector<1x4xf32>
    %22 = vector.broadcast %21 : vector<1x4xf32> to vector<256x4xf32>
    %23 = arith.addf %20, %22 : vector<256x4xf32>
    %c0_15 = arith.constant 0 : index
    %c0_16 = arith.constant 0 : index
    %24 = vector.load %arg8[%c0_15, %c0_16] : memref<256x4xf32, #tpu.memory_space<vmem>>, vector<256x4xf32>
    tpu.vector_store %arg8[%c0_15, %c0_16], %23 {strides = array<i32>} : memref<256x4xf32, #tpu.memory_space<vmem>>, vector<256x4xf32>,
    return
  }
  func.func @transform_0(%arg0: i32) -> (i32, i32) {
    %c0_i32 = arith.constant 0 : i32
    %c0_i32_0 = arith.constant 0 : i32
    return %arg0, %c0_i32 : i32, i32
  }
  func.func @transform_1(%arg0: i32) -> (i32, i32) {
    %c0_i32 = arith.constant 0 : i32
    %c0_i32_0 = arith.constant 0 : i32
    %c0_i32_1 = arith.constant 0 : i32
    return %c0_i32, %c0_i32_0 : i32, i32
  }
  func.func @transform_2(%arg0: i32) -> (i32, i32) {
    %c0_i32 = arith.constant 0 : i32
    %c0_i32_0 = arith.constant 0 : i32
    %c0_i32_1 = arith.constant 0 : i32
    return %c0_i32, %c0_i32_0 : i32, i32
  }
  func.func @transform_3(%arg0: i32) -> (i32, i32) {
    %c0_i32 = arith.constant 0 : i32
    %c0_i32_0 = arith.constant 0 : i32
    %c0_i32_1 = arith.constant 0 : i32
    return %c0_i32, %c0_i32_0 : i32, i32
  }
  func.func @transform_4(%arg0: i32) -> (i32, i32) {
    %c0_i32 = arith.constant 0 : i32
    %c0_i32_0 = arith.constant 0 : i32
    %c0_i32_1 = arith.constant 0 : i32
    return %c0_i32, %c0_i32_0 : i32, i32
  }
  func.func @transform_5(%arg0: i32) -> (i32, i32) {
    %c0_i32 = arith.constant 0 : i32
    %c0_i32_0 = arith.constant 0 : i32
    %c0_i32_1 = arith.constant 0 : i32
    return %c0_i32, %c0_i32_0 : i32, i32
  }
  func.func @transform_6(%arg0: i32) -> (i32, i32) {
    %c0_i32 = arith.constant 0 : i32
    %c0_i32_0 = arith.constant 0 : i32
    %c0_i32_1 = arith.constant 0 : i32
    return %c0_i32, %c0_i32_0 : i32, i32
  }
  func.func @transform_7(%arg0: i32) -> (i32, i32) {
    %c0_i32 = arith.constant 0 : i32
    %c0_i32_0 = arith.constant 0 : i32
    return %arg0, %c0_i32 : i32, i32
  }
}

</mosaic_0001>

<bundles_post_ra>
// kernel: tpu_custom_call.1
= control target key start
LH: loop header
LB: loop body
LE: loop exit
PB: predicated region body
PF: predicated region fallthrough
CT: control target
= control target key end

     0   :  { %s1632_s24 = smov 0   ;;  %s1986_s0 = inlined_call_operand.vmem [shape: f32[300,16], index: 0, kind: input, shape index: {}]   ;;  %s1987_s1 = inlined_call_operand.vmem [shape: f32[16,64], index: 1, kind: input, shape index: {}]   ;;  %s1988_s2 = inlined_call_operand.vmem [shape: f32[1,64], index: 2, kind: input, shape index: {}]   ;;  %s1989_s3 = inlined_call_operand.vmem [shape: f32[64,64], index: 3, kind: input, shape index: {}]   ;;  %s1990_s4 = inlined_call_operand.vmem [shape: f32[1,64], index: 4, kind: input, shape index: {}]   ;;  %s1991_s5 = inlined_call_operand.vmem [shape: f32[64,4], index: 5, kind: input, shape index: {}]   ;;  %s1992_s6 = inlined_call_operand.vmem [shape: f32[1,4], index: 6, kind: input, shape index: {}]   ;;  %s1993_s7 = inlined_call_operand.vmem [shape: f32[512,4], index: 7, kind: output, shape index: {}]  }
   0x1 LB: > { %s1213_s25 = sadd.s32 4294967295, %s1590_s24   ;;  %p1217_p0 = scmp.ge.s32.totalorder %s1590_s24, 1  ;;  %s1590_s24 = sphi %s1632_s24, %s17_s24  }
   0x2   : > { %p246_p1 = scmp.lt.s32.totalorder %s1590_s24, 3 }
   0x4   : > { %p247_p2 = pnand %p1217_p0, %p246_p1 }
   0x5   : > { %v351_v0 = vld [vmem:[%s1987_s1] sm:$0xff] (!%p247_p2)  ;;  %v352_v1 = vld [vmem:[%s1987_s1 + $0x8] sm:$0xff] (!%p247_p2)  ;;  %s1646_s30 = sshll.u32 (!%p247_p2), %s1213_s25, 5  ;;  %vm361_vm0 = vcmask (!%p247_p2), 130048   ;;  %v621_v15 = vld [vmem:[%s1989_s3 + $0x10] sm:$0xff] (!%p247_p2)  ;;  %vm638_vm1 = vcmask (!%p247_p2), 523264  }
   0x6   : > { %250 = sbr.rel (%p247_p2) target bundleno = 757 (0x2f5), region = 48  ;;  %v619_v2 = vld [vmem:[%s1989_s3] sm:$0xff] (!%p247_p2)  ;;  %v353_v3 = vpack.c.bf16 (!%p247_p2), %v352_v1, %v351_v0  ;;  %p287_p3 = scmp.lt.s32.totalorder (!%p247_p2), %s1646_s30, 37  ;;  %v620_v4 = vld [vmem:[%s1989_s3 + $0x8] sm:$0xff] (!%p247_p2)  ;;  %v622_v16 = vld [vmem:[%s1989_s3 + $0x18] sm:$0xff] (!%p247_p2)  ;;  %vm1124_vm2 = vcmask (!%p247_p2), 31744  }
   0x7   : > { %v627_v5 = vpack.c.bf16 (!%p247_p2), %v620_v4, %v619_v2  ;;  %v628_v29 = vpack.c.bf16 (!%p247_p2), %v622_v16, %v621_v15  ;;  %v623_v57 = vld [vmem:[%s1989_s3 + $0x20] sm:$0xff] (!%p247_p2)  ;;  %v624_v58 = vld [vmem:[%s1989_s3 + $0x28] sm:$0xff] (!%p247_p2)  ;;  %v625_v60 = vld [vmem:[%s1989_s3 + $0x30] sm:$0xff] (!%p247_p2)  ;;  %p297_p4 = scmp.lt.s32.totalorder (!%p247_p2), %s1646_s30, 63 }
   0x8   : > { %1332 = vmatprep.subr.bf16.mxu0 (!%p247_p2), %v353_v3  ;;  %1446 = vmatprep.subr.bf16.mxu1 (!%p247_p2), %v353_v3  ;;  %v629_v59 = vpack.c.bf16 (!%p247_p2), %v624_v58, %v623_v57  ;;  %v626_v61 = vld [vmem:[%s1989_s3 + $0x38] sm:$0xff] (!%p247_p2)  ;;  %v896_v63 = vld [vmem:[%s1991_s5] sm:$0xff] (!%p247_p2)  ;;  %v897_v0 = vld [vmem:[%s1991_s5 + $0x8] sm:$0xff] (!%p247_p2) }
   0x9   : > { %1333 = vmatpush3.bf16.msra.mxu0 (!%p247_p2), %v353_v3  ;;  %1447 = vmatpush3.bf16.msra.mxu1 (!%p247_p2), %v353_v3  ;;  %v630_v62 = vpack.c.bf16 (!%p247_p2), %v626_v61, %v625_v60  ;;  %v898_v1 = vld [vmem:[%s1991_s5 + $0x10] sm:$0xff] (!%p247_p2)  ;;  %v904_v2 = vpack.c.bf16 (!%p247_p2), %v897_v0, %v896_v63  ;;  %v899_v3 = vld [vmem:[%s1991_s5 + $0x18] sm:$0xff] (!%p247_p2) }
   0xa   : > { %1366 = vmatprep.subr.bf16.mxu1 (!%p247_p2), %v627_v5  ;;  %v905_v4 = vpack.c.bf16 (!%p247_p2), %v899_v3, %v898_v1 }
   0xb   : > { %1406 = vmatprep.subr.bf16.mxu0 (!%p247_p2), %v904_v2 }
   0xd   : > { %s288_s12 = scalar_select %p287_p3, %s1646_s30, 37 }
   0xe   : > { %s1995_s30 = smov (!%p297_p4, %s1646_s30), 63 }
   0xf   : > { %s1219_s13 = sshll.u32 %s288_s12, 3  ;;  %s1221_s29 = sshll.u32 %s1995_s30, 3 }
  0x10   : > { %s1659_s16 = scalar_lea.vmem %s1986_s0, %s1219_s13  ;;  %s1885_s12 = scalar_lea.vmem %s1993_s7, %s1221_s29 }
  0x11   : > { %v303_v6 = vld [vmem:[%s1659_s16] sm:$0xff]  ;;  %v304_v7 = vld [vmem:[%s1659_s16 + $0x8] sm:$0xff]  ;;  %v305_v8 = vld [vmem:[%s1659_s16 + $0x10] sm:$0xff] }
  0x12   : > { %v335_v9 = vpack.c.bf16 %v304_v7, %v303_v6  ;;  %v306_v10 = vld [vmem:[%s1659_s16 + $0x18] sm:$0xff]  ;;  %v307_v11 = vld [vmem:[%s1659_s16 + $0x20] sm:$0xff]  ;;  %v308_v12 = vld [vmem:[%s1659_s16 + $0x28] sm:$0xff] }
  0x13   : > { %v336_v13 = vpack.c.bf16 %v306_v10, %v305_v8  ;;  %v337_v14 = vpack.c.bf16 %v308_v12, %v307_v11  ;;  %v309_v17 = vld [vmem:[%s1659_s16 + $0x30] sm:$0xff]  ;;  %v310_v18 = vld [vmem:[%s1659_s16 + $0x38] sm:$0xff]  ;;  %v311_v19 = vld [vmem:[%s1659_s16 + $0x40] sm:$0xff] }
  0x14   : > { %1334 = vmatprep.mubr.msk.bf16.mxu0 %vm361_vm0, %v335_v9  ;;  %v312_v20 = vld [vmem:[%s1659_s16 + $0x48] sm:$0xff]  ;;  %v319_v21 = vld [vmem:[%s1659_s16 + $0x80] sm:$0xff]  ;;  %v321_v24 = vld [vmem:[%s1659_s16 + $0x90] sm:$0xff]  ;;  %v338_v30 = vpack.c.bf16 %v310_v18, %v309_v17 }
  0x15   : > { %1335 = vmatmul.mubr.msk.bf16.vlgmr.msra.gmra.mrb[0].mxu0 %vm361_vm0, %v336_v13  ;;  %v320_v22 = vld [vmem:[%s1659_s16 + $0x88] sm:$0xff]  ;;  %v322_v25 = vld [vmem:[%s1659_s16 + $0x98] sm:$0xff]  ;;  %v323_v26 = vld [vmem:[%s1659_s16 + $0xa0] sm:$0xff]  ;;  %v339_v32 = vpack.c.bf16 %v312_v20, %v311_v19 }
  0x16   : > { %1338 = vmatprep.mubr.msk.bf16.mxu0 %vm361_vm0, %v337_v14  ;;  %v343_v23 = vpack.c.bf16 %v320_v22, %v319_v21  ;;  %v344_v27 = vpack.c.bf16 %v322_v25, %v321_v24  ;;  %v324_v28 = vld [vmem:[%s1659_s16 + $0xa8] sm:$0xff]  ;;  %v325_v33 = vld [vmem:[%s1659_s16 + $0xb0] sm:$0xff]  ;;  %v326_v34 = vld [vmem:[%s1659_s16 + $0xb8] sm:$0xff]  ;;  %1407 = vmatpush3.bf16.msra.mxu0 %v904_v2 }
  0x17   : > { %v345_v31 = vpack.c.bf16 %v324_v28, %v323_v26  ;;  %v327_v35 = vld [vmem:[%s1659_s16 + $0xc0] sm:$0xff]  ;;  %v328_v36 = vld [vmem:[%s1659_s16 + $0xc8] sm:$0xff]  ;;  %v313_v37 = vld [vmem:[%s1659_s16 + $0x50] sm:$0xff]  ;;  %v346_v39 = vpack.c.bf16 %v326_v34, %v325_v33  ;;  %1408 = vmatprep.subr.bf16.mxu0 %v905_v4 }
  0x18   : > { %1350 = vmatprep.mubr.msk.bf16.mxu1 %vm361_vm0, %v343_v23  ;;  %v314_v38 = vld [vmem:[%s1659_s16 + $0x58] sm:$0xff]  ;;  %v315_v40 = vld [vmem:[%s1659_s16 + $0x60] sm:$0xff]  ;;  %v316_v41 = vld [vmem:[%s1659_s16 + $0x68] sm:$0xff]  ;;  %v347_v42 = vpack.c.bf16 %v328_v36, %v327_v35 }
  0x19   : > { %1351 = vmatmul.mubr.msk.bf16.vlgmr.msra.gmra.mrb[0].mxu1 %vm361_vm0, %v344_v27  ;;  %v340_v43 = vpack.c.bf16 %v314_v38, %v313_v37  ;;  %v341_v44 = vpack.c.bf16 %v316_v41, %v315_v40  ;;  %v329_v45 = vld [vmem:[%s1659_s16 + $0xd0] sm:$0xff]  ;;  %v330_v46 = vld [vmem:[%s1659_s16 + $0xd8] sm:$0xff]  ;;  %v331_v47 = vld [vmem:[%s1659_s16 + $0xe0] sm:$0xff] }
  0x1a   : > { %1354 = vmatprep.mubr.msk.bf16.mxu1 %vm361_vm0, %v345_v31  ;;  %1367 = vmatpush3.bf16.msra.mxu1 %v627_v5  ;;  %v332_v48 = vld [vmem:[%s1659_s16 + $0xe8] sm:$0xff]  ;;  %v317_v49 = vld [vmem:[%s1659_s16 + $0x70] sm:$0xff]  ;;  %v318_v50 = vld [vmem:[%s1659_s16 + $0x78] sm:$0xff]  ;;  %v348_v51 = vpack.c.bf16 %v330_v46, %v329_v45 }
  0x1b   : > { %1368 = vmatprep.subr.bf16.mxu1 %v628_v29  ;;  %v349_v52 = vpack.c.bf16 %v332_v48, %v331_v47  ;;  %v342_v53 = vpack.c.bf16 %v318_v50, %v317_v49  ;;  %v333_v54 = vld [vmem:[%s1659_s16 + $0xf0] sm:$0xff]  ;;  %v334_v55 = vld [vmem:[%s1659_s16 + $0xf8] sm:$0xff]  ;;  %1409 = vmatpush3.bf16.msra.mxu0 %v905_v4  ;;  %v1742_v5 = vld [vmem:[%s1988_s2] ss:$0 sm:$0xff] }
  0x1c   : > { %v350_v56 = vpack.c.bf16 %v334_v55, %v333_v54 }
  0x1d   : > { %1339 = vmatmul.mubr.msk.bf16.gmra.mrb[4].mxu0 %vm361_vm0, %v338_v30 }
  0x1e   : > { %1342 = vmatprep.mubr.msk.bf16.mxu0 %vm361_vm0, %v339_v32  ;;  %1369 = vmatpush3.bf16.msra.mxu1 %v628_v29 }
  0x1f   : > { %1370 = vmatprep.subr.bf16.mxu1 %v629_v59 }
  0x21   : > { %1355 = vmatmul.mubr.msk.bf16.gmra.mrb[4].mxu1 %vm361_vm0, %v346_v39 }
  0x22   : > { %1358 = vmatprep.mubr.msk.bf16.mxu1 %vm361_vm0, %v347_v42  ;;  %1371 = vmatpush3.bf16.msra.mxu1 %v629_v59 }
  0x23   : > { %1372 = vmatprep.subr.bf16.mxu1 %v630_v62 }
  0x25   : > { %1343 = vmatmul.mubr.msk.bf16.gmra.mrb[8].mxu0 %vm361_vm0, %v340_v43 }
  0x26   : > { %1346 = vmatprep.mubr.msk.bf16.mxu0 %vm361_vm0, %v341_v44  ;;  %1373 = vmatpush3.bf16.msra.mxu1 %v630_v62 }
  0x29   : > { %1359 = vmatmul.mubr.msk.bf16.gmra.mrb[8].mxu1 %vm361_vm0, %v348_v51 }
  0x2a   : > { %1362 = vmatprep.mubr.msk.bf16.mxu1 %vm361_vm0, %v349_v52 }
  0x2d   : > { %1347 = vmatmul.mubr.msk.bf16.gmra.mrb[12].mxu0 %vm361_vm0, %v342_v53 }
  0x31   : > { %1363 = vmatmul.mubr.msk.bf16.gmra.mrb[12].mxu1 %vm361_vm0, %v350_v56 }
  0xe8   : > { %v1336_v6 = vpop.f32.mrb[0].mxu0 }
  0xe9   : > { %v453_v7 = vadd.f32 %v1336_v6, %v1742_v5  ;;  %v444_v8 = vpop.f32.mrb[1].mxu0 }
  0xea   : > { %v445_v9 = vadd.f32 %v1742_v5, %v444_v8  ;;  %v1337_v10 = vpop.f32.mrb[2].mxu0 }
  0xeb   : > { %1456 = vtanh.f32 %v453_v7  ;;  %v456_v11 = vadd.f32 %v1337_v10, %v1742_v5  ;;  %v447_v12 = vpop.f32.mrb[3].mxu0 }
  0xec   : > { %1458 = vtanh.f32 %v445_v9  ;;  %v448_v13 = vadd.f32 %v1742_v5, %v447_v12  ;;  %v1352_v14 = vpop.f32.mrb[0].mxu1 }
  0xed   : > { %1460 = vtanh.f32 %v456_v11  ;;  %v517_v15 = vadd.f32 %v1352_v14, %v1742_v5  ;;  %v508_v16 = vpop.f32.mrb[1].mxu1 }
  0xee   : > { %1462 = vtanh.f32 %v448_v13  ;;  %v509_v17 = vadd.f32 %v1742_v5, %v508_v16  ;;  %v1353_v18 = vpop.f32.mrb[2].mxu1 }
  0xef   : > { %1464 = vtanh.f32 %v517_v15  ;;  %v520_v20 = vadd.f32 %v1353_v18, %v1742_v5  ;;  %v511_v21 = vpop.f32.mrb[3].mxu1 }
  0xf0   : > { %v1340_v19 = vpop.f32.mrb[4].mxu0  ;;  %1466 = vtanh.f32 %v509_v17  ;;  %v512_v28 = vadd.f32 %v1742_v5, %v511_v21 }
  0xf1   : > { %v469_v22 = vadd.f32 %v1340_v19, %v1742_v5  ;;  %v460_v23 = vpop.f32.mrb[5].mxu0  ;;  %1468 = vtanh.f32 %v520_v20 }
  0xf2   : > { %v461_v24 = vadd.f32 %v1742_v5, %v460_v23  ;;  %v1341_v25 = vpop.f32.mrb[6].mxu0 }
  0xf3   : > { %1470 = vtanh.f32 %v469_v22  ;;  %v472_v26 = vadd.f32 %v1341_v25, %v1742_v5  ;;  %v463_v27 = vpop.f32.mrb[7].mxu0 }
  0xf4   : > { %1472 = vtanh.f32 %v461_v24  ;;  %v464_v29 = vadd.f32 %v1742_v5, %v463_v27  ;;  %v1356_v31 = vpop.f32.mrb[4].mxu1 }
  0xf5   : > { %v1457_v30 = vpop.eup %1456  ;;  %1474 = vtanh.f32 %v472_v26  ;;  %v533_v33 = vadd.f32 %v1356_v31, %v1742_v5  ;;  %v524_v34 = vpop.f32.mrb[5].mxu1 }
  0xf6   : > { %v1459_v32 = vpop.eup %1458  ;;  %1476 = vtanh.f32 %v464_v29  ;;  %v525_v36 = vadd.f32 %v1742_v5, %v524_v34  ;;  %v1357_v37 = vpop.f32.mrb[6].mxu1 }
  0xf7   : > { %v1461_v35 = vpop.eup %1460  ;;  %1478 = vtanh.f32 %v512_v28  ;;  %v536_v41 = vadd.f32 %v1357_v37, %v1742_v5  ;;  %v527_v42 = vpop.f32.mrb[7].mxu1 }
  0xf8   : > { %v1463_v38 = vpop.eup %1462  ;;  %v604_v39 = vpack.c.bf16 %v1461_v35, %v1457_v30  ;;  %v1344_v40 = vpop.f32.mrb[8].mxu0  ;;  %1480 = vtanh.f32 %v533_v33  ;;  %v528_v52 = vadd.f32 %v1742_v5, %v527_v42 }
  0xf9   : > { %v485_v43 = vadd.f32 %v1344_v40, %v1742_v5  ;;  %v476_v44 = vpop.f32.mrb[9].mxu0  ;;  %v603_v45 = vpack.c.bf16 %v1463_v38, %v1459_v32  ;;  %1482 = vtanh.f32 %v525_v36  ;;  %v1760_v46 = vpop.eup %1464 }
  0xfa   : > { %v477_v47 = vadd.f32 %v1742_v5, %v476_v44  ;;  %v1345_v48 = vpop.f32.mrb[10].mxu0  ;;  %1484 = vtanh.f32 %v536_v41  ;;  %v1763_v49 = vpop.eup %1466 }
  0xfb   : > { %1486 = vtanh.f32 %v485_v43  ;;  %v488_v50 = vadd.f32 %v1345_v48, %v1742_v5  ;;  %v479_v51 = vpop.f32.mrb[11].mxu0  ;;  %1374 = vmatprep.mubr.msk.bf16.mxu1 %vm638_vm1, %v603_v45  ;;  %v1768_v53 = vpop.eup %1468 }
  0xfc   : > { %1488 = vtanh.f32 %v477_v47  ;;  %v480_v54 = vadd.f32 %v1742_v5, %v479_v51  ;;  %1375 = vmatmul.mubr.msk.bf16.vlgmr.msra.gmra.mrb[16].mxu1 %vm638_vm1, %v604_v39  ;;  %v1360_v56 = vpop.f32.mrb[8].mxu1  ;;  %v612_v57 = vpack.c.bf16 %v1768_v53, %v1760_v46  ;;  %v901_v46 = vld [vmem:[%s1991_s5 + $0x28] sm:$0xff] }
  0xfd   : > { %v1471_v55 = vpop.eup %1470  ;;  %1490 = vtanh.f32 %v488_v50  ;;  %v549_v59 = vadd.f32 %v1360_v56, %v1742_v5  ;;  %v540_v60 = vpop.f32.mrb[9].mxu1  ;;  %v900_v56 = vld [vmem:[%s1991_s5 + $0x20] sm:$0xff] }
  0xfe   : > { %v1473_v58 = vpop.eup %1472  ;;  %1492 = vtanh.f32 %v480_v54  ;;  %v541_v62 = vadd.f32 %v1742_v5, %v540_v60  ;;  %v1361_v63 = vpop.f32.mrb[10].mxu1  ;;  %v906_v53 = vpack.c.bf16 %v901_v46, %v900_v56  ;;  %v1825_v60 = vld [vmem:[%s1990_s4] ss:$0 sm:$0xff] }
  0xff   : > { %v1475_v61 = vpop.eup %1474  ;;  %1494 = vtanh.f32 %v528_v52  ;;  %v552_v3 = vadd.f32 %v1361_v63, %v1742_v5  ;;  %v543_v4 = vpop.f32.mrb[11].mxu1 }
 0x100   : > { %v1477_v0 = vpop.eup %1476  ;;  %v1348_v1 = vpop.f32.mrb[12].mxu0  ;;  %v606_v2 = vpack.c.bf16 %v1475_v61, %v1471_v55  ;;  %1496 = vtanh.f32 %v549_v59  ;;  %v544_v17 = vadd.f32 %v1742_v5, %v543_v4  ;;  %1410 = vmatprep.subr.bf16.mxu0 %v906_v53 }
 0x101   : > { %v1777_v6 = vpop.eup %1478  ;;  %v501_v7 = vadd.f32 %v1348_v1, %v1742_v5  ;;  %v492_v8 = vpop.f32.mrb[13].mxu0  ;;  %v605_v9 = vpack.c.bf16 %v1477_v0, %v1473_v58  ;;  %1498 = vtanh.f32 %v541_v62  ;;  %1411 = vmatpush3.bf16.msra.mxu0 %v906_v53  ;;  %v903_v58 = vld [vmem:[%s1991_s5 + $0x38] sm:$0xff] }
 0x102   : > { %v1780_v10 = vpop.eup %1480  ;;  %v493_v11 = vadd.f32 %v1742_v5, %v492_v8  ;;  %v1349_v12 = vpop.f32.mrb[14].mxu0  ;;  %1500 = vtanh.f32 %v552_v3  ;;  %v611_v13 = vpack.c.bf16 %v1777_v6, %v1763_v49 }
 0x103   : > { %v1483_v14 = vpop.eup %1482  ;;  %1502 = vtanh.f32 %v501_v7  ;;  %v504_v15 = vadd.f32 %v1349_v12, %v1742_v5  ;;  %v495_v16 = vpop.f32.mrb[15].mxu0  ;;  %1378 = vmatprep.mubr.msk.bf16.mxu1 %vm638_vm1, %v605_v9 }
 0x104   : > { %v1485_v18 = vpop.eup %1484  ;;  %1504 = vtanh.f32 %v493_v11  ;;  %v496_v19 = vadd.f32 %v1742_v5, %v495_v16  ;;  %1379 = vmatmul.mubr.msk.bf16.gmra.mrb[20].mxu1 %vm638_vm1, %v606_v2  ;;  %v1364_v21 = vpop.f32.mrb[12].mxu1 }
 0x105   : > { %v1487_v20 = vpop.eup %1486  ;;  %1506 = vtanh.f32 %v504_v15  ;;  %v614_v22 = vpack.c.bf16 %v1485_v18, %v1780_v10  ;;  %v565_v24 = vadd.f32 %v1364_v21, %v1742_v5  ;;  %v556_v25 = vpop.f32.mrb[13].mxu1 }
 0x106   : > { %v1489_v23 = vpop.eup %1488  ;;  %1508 = vtanh.f32 %v496_v19  ;;  %v557_v27 = vadd.f32 %v1742_v5, %v556_v25  ;;  %v1365_v28 = vpop.f32.mrb[14].mxu1 }
 0x107   : > { %v1491_v26 = vpop.eup %1490  ;;  %1510 = vtanh.f32 %v544_v17  ;;  %v568_v31 = vadd.f32 %v1365_v28, %v1742_v5  ;;  %v559_v32 = vpop.f32.mrb[15].mxu1 }
 0x108   : > { %v1493_v29 = vpop.eup %1492  ;;  %v608_v30 = vpack.c.bf16 %v1491_v26, %v1487_v20  ;;  %1512 = vtanh.f32 %v565_v24  ;;  %v560_v35 = vadd.f32 %v1742_v5, %v559_v32 }
 0x109   : > { %v1495_v33 = vpop.eup %1494  ;;  %v607_v34 = vpack.c.bf16 %v1493_v29, %v1489_v23  ;;  %1514 = vtanh.f32 %v557_v27 }
 0x10a   : > { %v1497_v36 = vpop.eup %1496  ;;  %1516 = vtanh.f32 %v568_v31  ;;  %v613_v37 = vpack.c.bf16 %v1495_v33, %v1483_v14 }
 0x10b   : > { %v1499_v38 = vpop.eup %1498  ;;  %1382 = vmatprep.mubr.msk.bf16.mxu1 %vm638_vm1, %v607_v34  ;;  %1518 = vtanh.f32 %v560_v35 }
 0x10c   : > { %v1501_v39 = vpop.eup %1500  ;;  %1383 = vmatmul.mubr.msk.bf16.gmra.mrb[24].mxu1 %vm638_vm1, %v608_v30 }
 0x10d   : > { %v1503_v40 = vpop.eup %1502  ;;  %v616_v41 = vpack.c.bf16 %v1501_v39, %v1497_v36 }
 0x10e   : > { %v1505_v42 = vpop.eup %1504 }
 0x10f   : > { %v1507_v43 = vpop.eup %1506 }
 0x110   : > { %v1509_v44 = vpop.eup %1508  ;;  %v610_v45 = vpack.c.bf16 %v1507_v43, %v1503_v40 }
 0x111   : > { %v1511_v47 = vpop.eup %1510  ;;  %v609_v48 = vpack.c.bf16 %v1509_v44, %v1505_v42 }
 0x112   : > { %v1513_v49 = vpop.eup %1512  ;;  %v615_v5 = vpack.c.bf16 %v1511_v47, %v1499_v38 }
 0x113   : > { %v1515_v50 = vpop.eup %1514  ;;  %1386 = vmatprep.mubr.msk.bf16.mxu1 %vm638_vm1, %v609_v48 }
 0x114   : > { %v1517_v51 = vpop.eup %1516  ;;  %1387 = vmatmul.mubr.msk.bf16.gmra.mrb[28].mxu1 %vm638_vm1, %v610_v45 }
 0x115   : > { %v1519_v52 = vpop.eup %1518  ;;  %1390 = vmatprep.mubr.msk.bf16.mxu1 %vm638_vm1, %v611_v13  ;;  %v618_v54 = vpack.c.bf16 %v1517_v51, %v1513_v49 }
 0x116   : > { %v617_v55 = vpack.c.bf16 %v1519_v52, %v1515_v50 }
 0x11c   : > { %1391 = vmatmul.mubr.msk.bf16.gmra.mrb[32].mxu1 %vm638_vm1, %v612_v57  ;;  %v902_v57 = vld [vmem:[%s1991_s5 + $0x30] sm:$0xff] }
 0x11d   : > { %1394 = vmatprep.mubr.msk.bf16.mxu1 %vm638_vm1, %v613_v37  ;;  %v907_v59 = vpack.c.bf16 %v903_v58, %v902_v57 }
 0x11f   : > { %1412 = vmatprep.subr.bf16.mxu0 %v907_v59 }
 0x120   : > { %1413 = vmatpush3.bf16.msra.mxu0 %v907_v59 }
 0x124   : > { %1395 = vmatmul.mubr.msk.bf16.gmra.mrb[36].mxu1 %vm638_vm1, %v614_v22 }
 0x125   : > { %1398 = vmatprep.mubr.msk.bf16.mxu1 %vm638_vm1, %v615_v5 }
 0x12c   : > { %1399 = vmatmul.mubr.msk.bf16.gmra.mrb[40].mxu1 %vm638_vm1, %v616_v41 }
 0x12d   : > { %1402 = vmatprep.mubr.msk.bf16.mxu1 %vm638_vm1, %v617_v55 }
 0x134   : > { %1403 = vmatmul.mubr.msk.bf16.gmra.mrb[44].mxu1 %vm638_vm1, %v618_v54 }
 0x1cf   : > { %v1376_v61 = vpop.f32.mrb[16].mxu1 }
 0x1d0   : > { %v730_v62 = vadd.f32 %v1376_v61, %v1825_v60  ;;  %v721_v63 = vpop.f32.mrb[17].mxu1 }
 0x1d1   : > { %v722_v0 = vadd.f32 %v1825_v60, %v721_v63  ;;  %v1377_v1 = vpop.f32.mrb[18].mxu1 }
 0x1d2   : > { %1520 = vtanh.f32 %v730_v62  ;;  %v733_v2 = vadd.f32 %v1377_v1, %v1825_v60  ;;  %v724_v3 = vpop.f32.mrb[19].mxu1 }
 0x1d3   : > { %1522 = vtanh.f32 %v722_v0  ;;  %v725_v4 = vadd.f32 %v1825_v60, %v724_v3 }
 0x1d4   : > { %1524 = vtanh.f32 %v733_v2 }
 0x1d5   : > { %1526 = vtanh.f32 %v725_v4 }
 0x1d7   : > { %v1380_v6 = vpop.f32.mrb[20].mxu1 }
 0x1d8   : > { %v746_v7 = vadd.f32 %v1380_v6, %v1825_v60  ;;  %v737_v8 = vpop.f32.mrb[21].mxu1 }
 0x1d9   : > { %v738_v9 = vadd.f32 %v1825_v60, %v737_v8  ;;  %v1381_v10 = vpop.f32.mrb[22].mxu1 }
 0x1da   : > { %1528 = vtanh.f32 %v746_v7  ;;  %v749_v11 = vadd.f32 %v1381_v10, %v1825_v60  ;;  %v740_v12 = vpop.f32.mrb[23].mxu1 }
 0x1db   : > { %1530 = vtanh.f32 %v738_v9  ;;  %v741_v13 = vadd.f32 %v1825_v60, %v740_v12 }
 0x1dc   : > { %v1521_v14 = vpop.eup %1520  ;;  %1532 = vtanh.f32 %v749_v11 }
 0x1dd   : > { %v1523_v15 = vpop.eup %1522  ;;  %1534 = vtanh.f32 %v741_v13 }
 0x1de   : > { %v1525_v16 = vpop.eup %1524 }
 0x1df   : > { %v1527_v17 = vpop.eup %1526  ;;  %v881_v18 = vpack.c.bf16 %v1525_v16, %v1521_v14  ;;  %v1384_v19 = vpop.f32.mrb[24].mxu1 }
 0x1e0   : > { %v762_v20 = vadd.f32 %v1384_v19, %v1825_v60  ;;  %v753_v21 = vpop.f32.mrb[25].mxu1  ;;  %v880_v22 = vpack.c.bf16 %v1527_v17, %v1523_v15 }
 0x1e1   : > { %v754_v23 = vadd.f32 %v1825_v60, %v753_v21  ;;  %v1385_v24 = vpop.f32.mrb[26].mxu1 }
 0x1e2   : > { %1536 = vtanh.f32 %v762_v20  ;;  %v765_v25 = vadd.f32 %v1385_v24, %v1825_v60  ;;  %v756_v26 = vpop.f32.mrb[27].mxu1  ;;  %1414 = vmatprep.mubr.msk.bf16.mxu0 %vm638_vm1, %v880_v22 }
 0x1e3   : > { %1538 = vtanh.f32 %v754_v23  ;;  %v757_v27 = vadd.f32 %v1825_v60, %v756_v26  ;;  %1415 = vmatmul.mubr.msk.bf16.vlgmr.msra.gmra.mrb[16].mxu0 %vm638_vm1, %v881_v18 }
 0x1e4   : > { %v1529_v28 = vpop.eup %1528  ;;  %1540 = vtanh.f32 %v765_v25 }
 0x1e5   : > { %v1531_v29 = vpop.eup %1530  ;;  %1542 = vtanh.f32 %v757_v27 }
 0x1e6   : > { %v1533_v30 = vpop.eup %1532 }
 0x1e7   : > { %v1535_v31 = vpop.eup %1534  ;;  %v1388_v32 = vpop.f32.mrb[28].mxu1  ;;  %v883_v33 = vpack.c.bf16 %v1533_v30, %v1529_v28 }
 0x1e8   : > { %v778_v34 = vadd.f32 %v1388_v32, %v1825_v60  ;;  %v769_v35 = vpop.f32.mrb[29].mxu1  ;;  %v882_v36 = vpack.c.bf16 %v1535_v31, %v1531_v29 }
 0x1e9   : > { %v770_v37 = vadd.f32 %v1825_v60, %v769_v35  ;;  %v1389_v38 = vpop.f32.mrb[30].mxu1 }
 0x1ea   : > { %1544 = vtanh.f32 %v778_v34  ;;  %v781_v39 = vadd.f32 %v1389_v38, %v1825_v60  ;;  %v772_v40 = vpop.f32.mrb[31].mxu1  ;;  %1418 = vmatprep.mubr.msk.bf16.mxu0 %vm638_vm1, %v882_v36 }
 0x1eb   : > { %1546 = vtanh.f32 %v770_v37  ;;  %v773_v41 = vadd.f32 %v1825_v60, %v772_v40  ;;  %1419 = vmatmul.mubr.msk.bf16.gmra.mrb[20].mxu0 %vm638_vm1, %v883_v33 }
 0x1ec   : > { %v1537_v42 = vpop.eup %1536  ;;  %1548 = vtanh.f32 %v781_v39 }
 0x1ed   : > { %v1539_v43 = vpop.eup %1538  ;;  %1550 = vtanh.f32 %v773_v41 }
 0x1ee   : > { %v1541_v44 = vpop.eup %1540 }
 0x1ef   : > { %v1543_v45 = vpop.eup %1542  ;;  %v1392_v47 = vpop.f32.mrb[32].mxu1  ;;  %v885_v48 = vpack.c.bf16 %v1541_v44, %v1537_v42 }
 0x1f0   : > { %v794_v49 = vadd.f32 %v1392_v47, %v1825_v60  ;;  %v785_v5 = vpop.f32.mrb[33].mxu1  ;;  %v884_v50 = vpack.c.bf16 %v1543_v45, %v1539_v43  ;;  %v1880_v47 = vld [vmem:[%s1992_s6] ss:$0 sm:$0xff] }
 0x1f1   : > { %v786_v51 = vadd.f32 %v1825_v60, %v785_v5  ;;  %v1393_v52 = vpop.f32.mrb[34].mxu1 }
 0x1f2   : > { %1552 = vtanh.f32 %v794_v49  ;;  %v797_v54 = vadd.f32 %v1393_v52, %v1825_v60  ;;  %v788_v55 = vpop.f32.mrb[35].mxu1  ;;  %1422 = vmatprep.mubr.msk.bf16.mxu0 %vm638_vm1, %v884_v50 }
 0x1f3   : > { %1554 = vtanh.f32 %v786_v51  ;;  %v789_v56 = vadd.f32 %v1825_v60, %v788_v55  ;;  %1423 = vmatmul.mubr.msk.bf16.gmra.mrb[24].mxu0 %vm638_vm1, %v885_v48 }
 0x1f4   : > { %v1545_v46 = vpop.eup %1544  ;;  %1556 = vtanh.f32 %v797_v54 }
 0x1f5   : > { %v1547_v53 = vpop.eup %1546  ;;  %1558 = vtanh.f32 %v789_v56 }
 0x1f6   : > { %v1549_v57 = vpop.eup %1548 }
 0x1f7   : > { %v1551_v58 = vpop.eup %1550  ;;  %v1396_v59 = vpop.f32.mrb[36].mxu1  ;;  %v887_v61 = vpack.c.bf16 %v1549_v57, %v1545_v46 }
 0x1f8   : > { %v810_v62 = vadd.f32 %v1396_v59, %v1825_v60  ;;  %v801_v63 = vpop.f32.mrb[37].mxu1  ;;  %v886_v0 = vpack.c.bf16 %v1551_v58, %v1547_v53 }
 0x1f9   : > { %v802_v1 = vadd.f32 %v1825_v60, %v801_v63  ;;  %v1397_v2 = vpop.f32.mrb[38].mxu1 }
 0x1fa   : > { %1560 = vtanh.f32 %v810_v62  ;;  %v813_v3 = vadd.f32 %v1397_v2, %v1825_v60  ;;  %v804_v4 = vpop.f32.mrb[39].mxu1  ;;  %1426 = vmatprep.mubr.msk.bf16.mxu0 %vm638_vm1, %v886_v0 }
 0x1fb   : > { %1562 = vtanh.f32 %v802_v1  ;;  %v805_v6 = vadd.f32 %v1825_v60, %v804_v4  ;;  %1427 = vmatmul.mubr.msk.bf16.gmra.mrb[28].mxu0 %vm638_vm1, %v887_v61 }
 0x1fc   : > { %v1553_v7 = vpop.eup %1552  ;;  %1564 = vtanh.f32 %v813_v3 }
 0x1fd   : > { %v1555_v8 = vpop.eup %1554  ;;  %1566 = vtanh.f32 %v805_v6 }
 0x1fe   : > { %v1557_v9 = vpop.eup %1556 }
 0x1ff   : > { %v1559_v10 = vpop.eup %1558  ;;  %v1400_v11 = vpop.f32.mrb[40].mxu1  ;;  %v889_v12 = vpack.c.bf16 %v1557_v9, %v1553_v7 }
 0x200   : > { %v826_v13 = vadd.f32 %v1400_v11, %v1825_v60  ;;  %v817_v14 = vpop.f32.mrb[41].mxu1  ;;  %v888_v15 = vpack.c.bf16 %v1559_v10, %v1555_v8 }
 0x201   : > { %v818_v16 = vadd.f32 %v1825_v60, %v817_v14  ;;  %v1401_v17 = vpop.f32.mrb[42].mxu1 }
 0x202   : > { %1568 = vtanh.f32 %v826_v13  ;;  %v829_v18 = vadd.f32 %v1401_v17, %v1825_v60  ;;  %v820_v19 = vpop.f32.mrb[43].mxu1  ;;  %1430 = vmatprep.mubr.msk.bf16.mxu0 %vm638_vm1, %v888_v15 }
 0x203   : > { %1570 = vtanh.f32 %v818_v16  ;;  %v821_v20 = vadd.f32 %v1825_v60, %v820_v19  ;;  %1431 = vmatmul.mubr.msk.bf16.gmra.mrb[32].mxu0 %vm638_vm1, %v889_v12 }
 0x204   : > { %v1561_v21 = vpop.eup %1560  ;;  %1572 = vtanh.f32 %v829_v18 }
 0x205   : > { %v1563_v22 = vpop.eup %1562  ;;  %1574 = vtanh.f32 %v821_v20 }
 0x206   : > { %v1565_v23 = vpop.eup %1564 }
 0x207   : > { %v1567_v24 = vpop.eup %1566  ;;  %v1404_v25 = vpop.f32.mrb[44].mxu1  ;;  %v891_v26 = vpack.c.bf16 %v1565_v23, %v1561_v21 }
 0x208   : > { %v842_v27 = vadd.f32 %v1404_v25, %v1825_v60  ;;  %v833_v28 = vpop.f32.mrb[45].mxu1  ;;  %v890_v29 = vpack.c.bf16 %v1567_v24, %v1563_v22 }
 0x209   : > { %v834_v30 = vadd.f32 %v1825_v60, %v833_v28  ;;  %v1405_v31 = vpop.f32.mrb[46].mxu1 }
 0x20a   : > { %1576 = vtanh.f32 %v842_v27  ;;  %v845_v32 = vadd.f32 %v1405_v31, %v1825_v60  ;;  %v836_v33 = vpop.f32.mrb[47].mxu1  ;;  %1434 = vmatprep.mubr.msk.bf16.mxu0 %vm638_vm1, %v890_v29 }
 0x20b   : > { %1578 = vtanh.f32 %v834_v30  ;;  %v837_v34 = vadd.f32 %v1825_v60, %v836_v33  ;;  %1435 = vmatmul.mubr.msk.bf16.gmra.mrb[36].mxu0 %vm638_vm1, %v891_v26 }
 0x20c   : > { %v1569_v35 = vpop.eup %1568  ;;  %1580 = vtanh.f32 %v845_v32 }
 0x20d   : > { %v1571_v36 = vpop.eup %1570  ;;  %1582 = vtanh.f32 %v837_v34 }
 0x20e   : > { %v1573_v37 = vpop.eup %1572 }
 0x20f   : > { %v1575_v38 = vpop.eup %1574  ;;  %v893_v39 = vpack.c.bf16 %v1573_v37, %v1569_v35 }
 0x210   : > { %v892_v40 = vpack.c.bf16 %v1575_v38, %v1571_v36 }
 0x212   : > { %1438 = vmatprep.mubr.msk.bf16.mxu0 %vm638_vm1, %v892_v40 }
 0x213   : > { %1439 = vmatmul.mubr.msk.bf16.gmra.mrb[40].mxu0 %vm638_vm1, %v893_v39 }
 0x214   : > { %v1577_v41 = vpop.eup %1576 }
 0x215   : > { %v1579_v42 = vpop.eup %1578 }
 0x216   : > { %v1581_v43 = vpop.eup %1580 }
 0x217   : > { %v1583_v60 = vpop.eup %1582  ;;  %v895_v44 = vpack.c.bf16 %v1581_v43, %v1577_v41 }
 0x218   : > { %v894_v45 = vpack.c.bf16 %v1583_v60, %v1579_v42 }
 0x21a   : > { %1442 = vmatprep.mubr.msk.bf16.mxu0 %vm638_vm1, %v894_v45 }
 0x21b   : > { %1443 = vmatmul.mubr.msk.bf16.gmra.mrb[44].mxu0 %vm638_vm1, %v895_v44 }
 0x2b6   : > { %v1416_v48 = vpop.f32.mrb[16].mxu0 }
 0x2b7   : > { %v1006_v49 = vadd.f32 %v1416_v48, %v1880_v47  ;;  %v997_v5 = vpop.f32.mrb[17].mxu0 }
 0x2b8   : > { %v998_v50 = vadd.f32 %v1880_v47, %v997_v5  ;;  %v1417_v51 = vpop.f32.mrb[18].mxu0 }
 0x2b9   : > { %1127 = vst.msk [vmem:[%s1885_s12 + $0x10] sm:$0xff] %vm1124_vm2, %v1006_v49  ;;  %v1009_v52 = vadd.f32 %v1417_v51, %v1880_v47  ;;  %v1000_v54 = vpop.f32.mrb[19].mxu0 }
 0x2ba   : > { %1125 = vst.msk [vmem:[%s1885_s12] sm:$0xff] %vm1124_vm2, %v998_v50  ;;  %v1001_v55 = vadd.f32 %v1880_v47, %v1000_v54 }
 0x2bb   : > { %1128 = vst.msk [vmem:[%s1885_s12 + $0x18] sm:$0xff] %vm1124_vm2, %v1009_v52 }
 0x2bc   : > { %1126 = vst.msk [vmem:[%s1885_s12 + $0x8] sm:$0xff] %vm1124_vm2, %v1001_v55 }
 0x2be   : > { %v1420_v56 = vpop.f32.mrb[20].mxu0 }
 0x2bf   : > { %v1022_v46 = vadd.f32 %v1420_v56, %v1880_v47  ;;  %v1013_v53 = vpop.f32.mrb[21].mxu0 }
 0x2c0   : > { %v1014_v57 = vadd.f32 %v1880_v47, %v1013_v53  ;;  %v1421_v58 = vpop.f32.mrb[22].mxu0 }
 0x2c1   : > { %1131 = vst.msk [vmem:[%s1885_s12 + $0x30] sm:$0xff] %vm1124_vm2, %v1022_v46  ;;  %v1025_v59 = vadd.f32 %v1421_v58, %v1880_v47  ;;  %v1016_v61 = vpop.f32.mrb[23].mxu0 }
 0x2c2   : > { %1129 = vst.msk [vmem:[%s1885_s12 + $0x20] sm:$0xff] %vm1124_vm2, %v1014_v57  ;;  %v1017_v62 = vadd.f32 %v1880_v47, %v1016_v61 }
 0x2c3   : > { %1132 = vst.msk [vmem:[%s1885_s12 + $0x38] sm:$0xff] %vm1124_vm2, %v1025_v59 }
 0x2c4   : > { %1130 = vst.msk [vmem:[%s1885_s12 + $0x28] sm:$0xff] %vm1124_vm2, %v1017_v62 }
 0x2c6   : > { %v1424_v63 = vpop.f32.mrb[24].mxu0 }
 0x2c7   : > { %v1038_v0 = vadd.f32 %v1424_v63, %v1880_v47  ;;  %v1029_v1 = vpop.f32.mrb[25].mxu0 }
 0x2c8   : > { %v1030_v2 = vadd.f32 %v1880_v47, %v1029_v1  ;;  %v1425_v3 = vpop.f32.mrb[26].mxu0 }
 0x2c9   : > { %1135 = vst.msk [vmem:[%s1885_s12 + $0x50] sm:$0xff] %vm1124_vm2, %v1038_v0  ;;  %v1041_v4 = vadd.f32 %v1425_v3, %v1880_v47  ;;  %v1032_v6 = vpop.f32.mrb[27].mxu0 }
 0x2ca   : > { %1133 = vst.msk [vmem:[%s1885_s12 + $0x40] sm:$0xff] %vm1124_vm2, %v1030_v2  ;;  %v1033_v7 = vadd.f32 %v1880_v47, %v1032_v6 }
 0x2cb   : > { %1136 = vst.msk [vmem:[%s1885_s12 + $0x58] sm:$0xff] %vm1124_vm2, %v1041_v4 }
 0x2cc   : > { %1134 = vst.msk [vmem:[%s1885_s12 + $0x48] sm:$0xff] %vm1124_vm2, %v1033_v7 }
 0x2ce   : > { %v1428_v8 = vpop.f32.mrb[28].mxu0 }
 0x2cf   : > { %v1054_v9 = vadd.f32 %v1428_v8, %v1880_v47  ;;  %v1045_v10 = vpop.f32.mrb[29].mxu0 }
 0x2d0   : > { %v1046_v11 = vadd.f32 %v1880_v47, %v1045_v10  ;;  %v1429_v12 = vpop.f32.mrb[30].mxu0 }
 0x2d1   : > { %1139 = vst.msk [vmem:[%s1885_s12 + $0x70] sm:$0xff] %vm1124_vm2, %v1054_v9  ;;  %v1057_v13 = vadd.f32 %v1429_v12, %v1880_v47  ;;  %v1048_v14 = vpop.f32.mrb[31].mxu0 }
 0x2d2   : > { %1137 = vst.msk [vmem:[%s1885_s12 + $0x60] sm:$0xff] %vm1124_vm2, %v1046_v11  ;;  %v1049_v15 = vadd.f32 %v1880_v47, %v1048_v14 }
 0x2d3   : > { %1140 = vst.msk [vmem:[%s1885_s12 + $0x78] sm:$0xff] %vm1124_vm2, %v1057_v13 }
 0x2d4   : > { %1138 = vst.msk [vmem:[%s1885_s12 + $0x68] sm:$0xff] %vm1124_vm2, %v1049_v15 }
 0x2d6   : > { %v1432_v16 = vpop.f32.mrb[32].mxu0 }
 0x2d7   : > { %v1070_v17 = vadd.f32 %v1432_v16, %v1880_v47  ;;  %v1061_v18 = vpop.f32.mrb[33].mxu0 }
 0x2d8   : > { %v1062_v19 = vadd.f32 %v1880_v47, %v1061_v18  ;;  %v1433_v20 = vpop.f32.mrb[34].mxu0 }
 0x2d9   : > { %1143 = vst.msk [vmem:[%s1885_s12 + $0x90] sm:$0xff] %vm1124_vm2, %v1070_v17  ;;  %v1073_v21 = vadd.f32 %v1433_v20, %v1880_v47  ;;  %v1064_v22 = vpop.f32.mrb[35].mxu0 }
 0x2da   : > { %1141 = vst.msk [vmem:[%s1885_s12 + $0x80] sm:$0xff] %vm1124_vm2, %v1062_v19  ;;  %v1065_v23 = vadd.f32 %v1880_v47, %v1064_v22 }
 0x2db   : > { %1144 = vst.msk [vmem:[%s1885_s12 + $0x98] sm:$0xff] %vm1124_vm2, %v1073_v21 }
 0x2dc   : > { %1142 = vst.msk [vmem:[%s1885_s12 + $0x88] sm:$0xff] %vm1124_vm2, %v1065_v23 }
 0x2de   : > { %v1436_v24 = vpop.f32.mrb[36].mxu0 }
 0x2df   : > { %v1086_v25 = vadd.f32 %v1436_v24, %v1880_v47  ;;  %v1077_v26 = vpop.f32.mrb[37].mxu0 }
 0x2e0   : > { %v1078_v27 = vadd.f32 %v1880_v47, %v1077_v26  ;;  %v1437_v28 = vpop.f32.mrb[38].mxu0 }
 0x2e1   : > { %1147 = vst.msk [vmem:[%s1885_s12 + $0xb0] sm:$0xff] %vm1124_vm2, %v1086_v25  ;;  %v1089_v29 = vadd.f32 %v1437_v28, %v1880_v47  ;;  %v1080_v30 = vpop.f32.mrb[39].mxu0 }
 0x2e2   : > { %1145 = vst.msk [vmem:[%s1885_s12 + $0xa0] sm:$0xff] %vm1124_vm2, %v1078_v27  ;;  %v1081_v31 = vadd.f32 %v1880_v47, %v1080_v30 }
 0x2e3   : > { %1148 = vst.msk [vmem:[%s1885_s12 + $0xb8] sm:$0xff] %vm1124_vm2, %v1089_v29 }
 0x2e4   : > { %1146 = vst.msk [vmem:[%s1885_s12 + $0xa8] sm:$0xff] %vm1124_vm2, %v1081_v31 }
 0x2e6   : > { %v1440_v32 = vpop.f32.mrb[40].mxu0 }
 0x2e7   : > { %v1102_v33 = vadd.f32 %v1440_v32, %v1880_v47  ;;  %v1093_v34 = vpop.f32.mrb[41].mxu0 }
 0x2e8   : > { %v1094_v35 = vadd.f32 %v1880_v47, %v1093_v34  ;;  %v1441_v36 = vpop.f32.mrb[42].mxu0 }
 0x2e9   : > { %1151 = vst.msk [vmem:[%s1885_s12 + $0xd0] sm:$0xff] %vm1124_vm2, %v1102_v33  ;;  %v1105_v37 = vadd.f32 %v1441_v36, %v1880_v47  ;;  %v1096_v38 = vpop.f32.mrb[43].mxu0 }
 0x2ea   : > { %1149 = vst.msk [vmem:[%s1885_s12 + $0xc0] sm:$0xff] %vm1124_vm2, %v1094_v35  ;;  %v1097_v39 = vadd.f32 %v1880_v47, %v1096_v38 }
 0x2eb   : > { %1152 = vst.msk [vmem:[%s1885_s12 + $0xd8] sm:$0xff] %vm1124_vm2, %v1105_v37 }
 0x2ec   : > { %1150 = vst.msk [vmem:[%s1885_s12 + $0xc8] sm:$0xff] %vm1124_vm2, %v1097_v39 }
 0x2ee   : > { %v1444_v40 = vpop.f32.mrb[44].mxu0 }
 0x2ef   : > { %v1118_v41 = vadd.f32 %v1444_v40, %v1880_v47  ;;  %v1109_v42 = vpop.f32.mrb[45].mxu0 }
 0x2f0   : > { %v1110_v43 = vadd.f32 %v1880_v47, %v1109_v42  ;;  %v1445_v60 = vpop.f32.mrb[46].mxu0 }
 0x2f1   : > { %1155 = vst.msk [vmem:[%s1885_s12 + $0xf0] sm:$0xff] %vm1124_vm2, %v1118_v41  ;;  %v1121_v44 = vadd.f32 %v1445_v60, %v1880_v47  ;;  %v1112_v45 = vpop.f32.mrb[47].mxu0 }
 0x2f2   : > { %1153 = vst.msk [vmem:[%s1885_s12 + $0xe0] sm:$0xff] %vm1124_vm2, %v1110_v43  ;;  %v1113_v48 = vadd.f32 %v1880_v47, %v1112_v45 }
 0x2f3   : > { %1156 = vst.msk [vmem:[%s1885_s12 + $0xf8] sm:$0xff] %vm1124_vm2, %v1121_v44 }
 0x2f4   : > { %1154 = vst.msk [vmem:[%s1885_s12 + $0xe8] sm:$0xff] %vm1124_vm2, %v1113_v48 }
 0x2f5 PF: > { %s17_s24 = sadd.s32 1, %s1590_s24  }
 0x2f6   : > { %p14_p5 = scmp.ge.s32.totalorder %s17_s24, 4  }
 0x2f8   :  { %16 = sbr.rel (!%p14_p5) target bundleno = 1 (0x1), region = 78 }

</bundles_post_ra>
